<compile_context>
chip_gen: v5e
topology: v5e:2x2
jax: 0.10.0
libtpu: 0.0.40
codegen_flags: <defaults>
</compile_context>

<pallas_src>
import functools

import jax
import jax.numpy as jnp
from jax.experimental import pallas as pl
from jax.experimental.pallas import tpu as pltpu

_LANE = 128
_SUBLANE = 8
# ~256K elements per block (= 1 MiB for f32, 512 KiB for bf16). With default
# double-buffering of input + output that is ~4 MiB of scoped VMEM — safe on
# v5e (16 MiB default scoped), v6e (32 MiB) and v7x (32 MiB scoped / 64 MiB
# physical), while being large enough to hit ~85% of HBM roofline.
_TARGET_BLOCK_ELEMS = 256 * 1024


def _quant_kernel(scale_ref, offset_ref, x_ref, o_ref, *, qmin, qmax):
    """Fake-quant (quantize + dequantize) elementwise hot path.

    scale / offset are precomputed scalars in SMEM; the body is pure VPU work
    on one large lane-dense VMEM tile DMA'd in the input's native dtype.
    """
    scale = scale_ref[0, 0]
    offset = offset_ref[0, 0]            # offset = zero_point - qmin * scale
    x = x_ref[...].astype(jnp.float32)
    # (x - offset) is bit-identical to PyTorch's x + (qmin*scale - zp).
    y = (x - offset) / scale             # exact divide: keeps rounding bit-faithful
    y = jnp.round(jnp.clip(y, qmin, qmax))
    o_ref[...] = (y * scale + offset).astype(o_ref.dtype)


def quant_th_update(x, running_zero_point, running_range, num_bits=8):
    """QuantThUpdate.forward (measure=False, per_ch_input=False, signed fake-quant)."""
    orig_shape = x.shape
    n = x.size
    if n == 0:
        return x

    qmin = -2.0 ** (num_bits - 1)
    qmax = qmin + 2.0 ** num_bits - 1.0

    # --- scalar qparam math: done once, outside the grid (matches PyTorch) ---
    rr = jnp.clip(jnp.asarray(running_range, jnp.float32).reshape(()), 1e-6, 1e5)
    rz = jnp.asarray(running_zero_point, jnp.float32).reshape(())
    scale = rr / (qmax - qmin)
    zp_round = jnp.round(qmin - rz / scale)
    zero_point = (qmin - jnp.clip(zp_round, qmin, qmax)) * scale
    offset = zero_point - qmin * scale
    scale2d = scale.reshape(1, 1)
    offset2d = offset.reshape(1, 1)

    # --- layout: lane-dense (rows, width) slab in the native dtype, no copy ---
    flat = x.reshape(-1)
    width = next((w for w in (1024, 512, 256, _LANE) if n % w == 0), None)
    pad = 0
    if width is None:
        # Rare fallback (n not a multiple of 128): tail-pad; costs one copy.
        width = _LANE
        pad = (-n) % (_LANE * _SUBLANE)
        flat = jnp.pad(flat, (0, pad))
    rows = (n + pad) // width
    x2 = flat.reshape(rows, width)

    # --- block sizing: big blocks; full-array block for small inputs ---
    target_rows = max(_SUBLANE, _TARGET_BLOCK_ELEMS // width)
    if rows <= target_rows:
        block_rows = rows                 # block == full array: always legal
    else:
        block_rows = (target_rows // 32) * 32   # sublane multiple for any dtype
    grid = (pl.cdiv(rows, block_rows),)   # partial trailing block handled by Pallas

    out2 = pl.pallas_call(
        functools.partial(_quant_kernel, qmin=qmin, qmax=qmax),
        out_shape=jax.ShapeDtypeStruct((rows, width), x.dtype),
        grid=grid,
        in_specs=[
            pl.BlockSpec((1, 1), lambda i: (0, 0), memory_space=pltpu.SMEM),
            pl.BlockSpec((1, 1), lambda i: (0, 0), memory_space=pltpu.SMEM),
            pl.BlockSpec((block_rows, width), lambda i: (i, 0)),
        ],
        out_specs=pl.BlockSpec((block_rows, width), lambda i: (i, 0)),
        compiler_params=pltpu.CompilerParams(
            dimension_semantics=("parallel",),
            vmem_limit_bytes=32 * 1024 * 1024,
        ),
    )(scale2d, offset2d, x2)

    out_flat = out2.reshape(-1)
    if pad:
        out_flat = out_flat[:n]
    return out_flat.reshape(orig_shape)


def _reference(x, running_zero_point, running_range, num_bits=8):
    """Plain-JAX replica of the PyTorch forward (for a sanity check)."""
    qmin = -2.0 ** (num_bits - 1)
    qmax = qmin + 2.0 ** num_bits - 1.0
    rr = jnp.clip(running_range, 1e-6, 1e5)
    scale = rr / (qmax - qmin)
    zpr = jnp.round(qmin - running_zero_point / scale)
    zp = (qmin - jnp.clip(zpr, qmin, qmax)) * scale
    y = (x + qmin * scale - zp) / scale
    y = jnp.round(jnp.clip(y, qmin, qmax))
    return y * scale + (zp - qmin * scale)


if __name__ == "__main__":
    key = jax.random.PRNGKey(0)
    # NCHW input, matching the PyTorch convention.
    x = jax.random.normal(key, (2, 4, 16, 16), dtype=jnp.float32)

    # Deterministic parameter init, same as nn.Parameter(torch.ones(*shape_measure))
    shape_measure = (1,)
    running_zero_point = jnp.ones(shape_measure, jnp.float32)
    running_range = jnp.ones(shape_measure, jnp.float32)

    out = quant_th_update(x, running_zero_point, running_range, num_bits=8)
    out = jax.block_until_ready(out)

    ref = _reference(x, running_zero_point, running_range, num_bits=8)
    assert out.shape == x.shape and out.dtype == x.dtype
    assert jnp.allclose(out, ref, atol=1e-5, rtol=1e-5)

    # TODO(synk): stochastic=True noise path and the straight-through backward
    # (Round.backward) are not part of this forward-only kernel.

    print("KERNEL_OK")
</pallas_src>

<mosaic_0001>
module attributes {stable_mosaic.version = 11 : i64} {
  func.func @_quant_kernel(%arg0: i32, %arg1: memref<1x1xf32, #tpu.memory_space<smem>>, %arg2: memref<1x1xf32, #tpu.memory_space<smem>>, %arg3: memref<2x1024xf32, #tpu.memory_space<vmem>>, %arg4: memref<2x1024xf32, #tpu.memory_space<vmem>>) attributes {dimension_semantics = [#tpu.dimension_semantics<parallel>], iteration_bounds = array<i64: 1>, scalar_prefetch = 0 : i64, scratch_operands = 0 : i64, tpu.core_type = #tpu.core_type<tc>, window_params = [{transform_indices = @transform_0, window_bounds = array<i64: 1, 1>}, {transform_indices = @transform_1, window_bounds = array<i64: 1, 1>}, {transform_indices = @transform_2, window_bounds = array<i64: 2, 1024>}, {transform_indices = @transform_3, window_bounds = array<i64: 2, 1024>}]} {
    %c0 = arith.constant 0 : index
    %c0_0 = arith.constant 0 : index
    %0 = memref.load %arg1[%c0, %c0_0] : memref<1x1xf32, #tpu.memory_space<smem>>
    %c0_1 = arith.constant 0 : index
    %c0_2 = arith.constant 0 : index
    %1 = memref.load %arg2[%c0_1, %c0_2] : memref<1x1xf32, #tpu.memory_space<smem>>
    %c0_3 = arith.constant 0 : index
    %c0_4 = arith.constant 0 : index
    %2 = vector.load %arg3[%c0_3, %c0_4] : memref<2x1024xf32, #tpu.memory_space<vmem>>, vector<2x1024xf32>
    %3 = vector.broadcast %1 : f32 to vector<2x1024xf32>
    %4 = arith.subf %2, %3 : vector<2x1024xf32>
    %5 = vector.broadcast %0 : f32 to vector<2x1024xf32>
    %6 = arith.divf %4, %5 : vector<2x1024xf32>
    %cst = arith.constant -1.280000e+02 : f32
    %cst_5 = arith.constant 1.270000e+02 : f32
    %7 = vector.broadcast %cst : f32 to vector<2x1024xf32>
    %8 = arith.maximumf %7, %6 : vector<2x1024xf32>
    %9 = vector.broadcast %cst_5 : f32 to vector<2x1024xf32>
    %10 = arith.minimumf %9, %8 : vector<2x1024xf32>
    %11 = math.roundeven %10 : vector<2x1024xf32>
    %12 = vector.broadcast %0 : f32 to vector<2x1024xf32>
    %13 = arith.mulf %11, %12 : vector<2x1024xf32>
    %14 = vector.broadcast %1 : f32 to vector<2x1024xf32>
    %15 = arith.addf %13, %14 : vector<2x1024xf32>
    %c0_6 = arith.constant 0 : index
    %c0_7 = arith.constant 0 : index
    %16 = vector.load %arg4[%c0_6, %c0_7] : memref<2x1024xf32, #tpu.memory_space<vmem>>, vector<2x1024xf32>
    tpu.vector_store %arg4[%c0_6, %c0_7], %15 {strides = array<i32>} : memref<2x1024xf32, #tpu.memory_space<vmem>>, vector<2x1024xf32>,
    return
  }
  func.func @transform_0(%arg0: i32) -> (i32, i32) {
    %c0_i32 = arith.constant 0 : i32
    %c0_i32_0 = arith.constant 0 : i32
    %c0_i32_1 = arith.constant 0 : i32
    return %c0_i32, %c0_i32_0 : i32, i32
  }
  func.func @transform_1(%arg0: i32) -> (i32, i32) {
    %c0_i32 = arith.constant 0 : i32
    %c0_i32_0 = arith.constant 0 : i32
    %c0_i32_1 = arith.constant 0 : i32
    return %c0_i32, %c0_i32_0 : i32, i32
  }
  func.func @transform_2(%arg0: i32) -> (i32, i32) {
    %c0_i32 = arith.constant 0 : i32
    %c0_i32_0 = arith.constant 0 : i32
    return %arg0, %c0_i32 : i32, i32
  }
  func.func @transform_3(%arg0: i32) -> (i32, i32) {
    %c0_i32 = arith.constant 0 : i32
    %c0_i32_0 = arith.constant 0 : i32
    return %arg0, %c0_i32 : i32, i32
  }
}

</mosaic_0001>

<bundles_post_ra>
// kernel: tpu_custom_call.1
= control target key start
LH: loop header
LB: loop body
LE: loop exit
PB: predicated region body
PF: predicated region fallthrough
CT: control target
= control target key end

     0   :  { %10 = vsyncpa [#allocation5], 0  ;;  %s190_s0 = inlined_call_operand.<no memory space> [shape: f32[1,1], index: 0, kind: input, shape index: {}]   ;;  %s191_s1 = inlined_call_operand.<no memory space> [shape: f32[1,1], index: 1, kind: input, shape index: {}]   ;;  %s192_s2 = inlined_call_operand.hbm [shape: f32[2,1024], index: 2, kind: input, shape index: {}]   ;;  %s193_s3 = inlined_call_operand.hbm [shape: f32[2,1024], index: 3, kind: output, shape index: {}]  }
   0x1   :  { %11 = vsyncpa [#allocation6], 0  ;;  %s21_s14 = sshll.u32 %s192_s2, 4  ;;  %s156_s15 = smov [#allocation4]   ;;  %s22_s14 = int_to_ptr.hbm [resolvable:$true] %s21_s14 }
   0x2   :  { %s23_s16 = sshll.u32 %s156_s15, 4  ;;  %s24_s16 = int_to_ptr.vmem [resolvable:$true] %s23_s16 }
   0x3   :  { %26 = dma.hbm_to_vmem [thread:$0]  %s22_s14, 256, %s24_s16, [#allocation5]  }
   0x4   :  { %152 = dma.done.wait [#allocation5], 256  }
   0x5   :  { %153 = vsyncadd [#allocation5], 4294967040  ;;  %v38_v0 = vstv %s190_s0  ;;  %v33_v6 = vld [vmem:[#allocation4] sm:$0xff]  ;;  %v34_v7 = vld [vmem:[#allocation4 + $0x8] sm:$0xff]  ;;  %v35_v8 = vstv %s191_s1  ;;  %s157_s0 = smov [#allocation7]   ;;  %s74_s22 = sshll.u32 %s193_s3, 4  ;;  %s75_s22 = int_to_ptr.hbm [resolvable:$true] %s74_s22 }
   0x6   :  { %102 = vrcp.f32 %v38_v0  ;;  %v50_v3 = vand.u32 2147483648, %v38_v0  ;;  %vm44_vm0 = vweird.f32 %v38_v0  ;;  %v48_v5 = vand.u32 2147483647, %v38_v0  ;;  %s72_s1 = sshll.u32 %s157_s0, 4  ;;  %s73_s1 = int_to_ptr.vmem [resolvable:$true] %s72_s1 }
   0x7   :  { %v36_v11 = vsub.f32 %v33_v6, %v35_v8  ;;  %v37_v12 = vsub.f32 %v34_v7, %v35_v8 }
   0x8   :  { %v51_v10 = vor.u32 1.1754944e-38, %v50_v3  ;;  %vm49_vm3 = vcmp.eq.f32.partialorder %v48_v5, 8.507059e+37 }
   0xc   :  { %v103_v1 = vpop.eup %102 }
   0xd   :  { %v40_v2 = vmul.f32 %v103_v1, %v38_v0  ;;  %vm45_vm1 = vweird.f32 %v103_v1 }
   0xe   :  { %vm46_vm2 = vmor %vm44_vm0, %vm45_vm1 }
   0xf   :  { %v41_v4 = vsub.f32 1.0, %v40_v2 }
  0x11   :  { %v42_v9 = vmul.f32 %v103_v1, %v41_v4 }
  0x13   :  { %v43_v13 = vadd.f32 %v103_v1, %v42_v9 }
  0x15   :  { %v47_v14 = vsel %vm46_vm2, %v103_v1, %v43_v13 }
  0x16   :  { %v52_v15 = vsel %vm49_vm3, %v51_v10, %v47_v14 }
  0x17   :  { %v53_v16 = vmul.f32 %v52_v15, %v36_v11  ;;  %v54_v17 = vmul.f32 %v52_v15, %v37_v12 }
  0x19   :  { %v55_v18 = vmax.f32 %v53_v16, -128.0  ;;  %v56_v19 = vmax.f32 %v54_v17, -128.0 }
  0x1b   :  { %v57_v20 = vmin.f32 %v55_v18, 127.0  ;;  %v58_v21 = vmin.f32 %v56_v19, 127.0 }
  0x1d   :  { %v86_v22 = vcvt.f32.s32 %v57_v20  ;;  %v84_v23 = vand.u32 2147483647, %v57_v20  ;;  %v94_v24 = vcvt.f32.s32 %v58_v21  ;;  %v89_v26 = vand.u32 2147483648, %v57_v20 }
  0x1e   :  { %v92_v27 = vand.u32 2147483647, %v58_v21  ;;  %v97_v29 = vand.u32 2147483648, %v58_v21 }
  0x1f   :  { %v87_v25 = vcvt.s32.f32 %v86_v22  ;;  %v95_v28 = vcvt.s32.f32 %v94_v24  ;;  %vm85_vm4 = vcmp.lt.f32.partialorder %v84_v23, 8388608.0 }
  0x20   :  { %vm93_vm5 = vcmp.lt.f32.partialorder %v92_v27, 8388608.0 }
  0x21   :  { %v88_v30 = vand.u32 2147483647, %v87_v25  ;;  %v96_v31 = vand.u32 2147483647, %v95_v28 }
  0x23   :  { %v90_v32 = vor.u32 %v89_v26, %v88_v30  ;;  %v98_v33 = vor.u32 %v97_v29, %v96_v31 }
  0x25   :  { %v91_v34 = vsel %vm85_vm4, %v90_v32, %v57_v20  ;;  %v99_v36 = vsel %vm93_vm5, %v98_v33, %v58_v21 }
  0x26   :  { %v61_v35 = vmul.f32 %v91_v34, %v38_v0  ;;  %v62_v37 = vmul.f32 %v99_v36, %v38_v0 }
  0x28   :  { %v63_v38 = vadd.f32 %v61_v35, %v35_v8  ;;  %v64_v39 = vadd.f32 %v62_v37, %v35_v8 }
  0x2a   :  { %65 = vst [vmem:[#allocation7] sm:$0xff] %v63_v38 }
  0x2b   :  { %66 = vst [vmem:[#allocation7 + $0x8] sm:$0xff] %v64_v39 }
  0x2c   :  { %77 = dma.vmem_to_hbm [thread:$0]  %s73_s1, 256, %s75_s22, [#allocation6]  }
  0x2d   :  { %154 = dma.done.wait [#allocation6], 256  }
  0x2e   :  { %155 = vsyncadd [#allocation6], 4294967040 }
  0x2f   :  { %82 = vsyncpa [#allocation5], 1 }
  0x30   :  { %83 = vsyncpa [#allocation6], 1 }

</bundles_post_ra>
